<compile_context>
chip_gen: v5e
topology: v5e:2x2
jax: 0.10.0
libtpu: 0.0.40
codegen_flags: <defaults>
</compile_context>

<pallas_src>
import functools

import jax
import jax.numpy as jnp
from jax.experimental import pallas as pl
from jax.experimental.pallas import tpu as pltpu


# ------------------------------- helpers -------------------------------------

def _round_up(x, m):
    return ((x + m - 1) // m) * m


def _device_kind():
    try:
        return jax.devices()[0].device_kind.lower()
    except Exception:
        return ""


def _tpu_vmem_capacity():
    try:
        return int(pltpu.get_tpu_info().vmem_capacity_bytes)
    except Exception:
        pass
    kind = _device_kind()
    if ("v7" in kind) or ("7x" in kind):
        return 64 << 20          # per-TensorCore on v7x
    return 128 << 20             # v5e / v6e physical VMEM


def _default_compute_dtype():
    kind = _device_kind()
    if any(t in kind for t in ("v6", "v7", "7x")):
        return jnp.bfloat16      # bf16 MXU native; f32 accumulation in-kernel
    return jnp.float32


# ----------------------------- Pallas kernel ----------------------------------

def _conv_bn_relu_kernel(x_ref, w_ref, b_ref, o_ref, acc_ref, *, offsets, m, n_ci):
    """Implicit-GEMM conv + folded-BN bias + ReLU.

    x_ref:   (1, L_pad, TCI)   flattened activation slab (one image, one K tile)
    w_ref:   (n_taps, TCI, TCO) folded conv weights
    b_ref:   (1, TCO)           folded BN bias
    o_ref:   (1, M_pad, TCO)    lane-dense output block
    acc_ref: (M_pad, TCO) f32   scratch, resident across the K (ci) grid axis

    Each tap is a *contiguous* static row-slice of the flat slab and its dot
    result is accumulated directly into acc_ref (no giant vreg live range).
    """
    # First tap: write (ci == 0) instead of zero-init + add.
    d0 = jnp.dot(x_ref[0, pl.ds(offsets[0], m), :], w_ref[0],
                 preferred_element_type=jnp.float32)
    if n_ci == 1:
        acc_ref[...] = d0
    else:
        ci = pl.program_id(2)

        @pl.when(ci == 0)
        def _():
            acc_ref[...] = d0

        @pl.when(ci > 0)
        def _():
            acc_ref[...] += d0

    for t in range(1, len(offsets)):
        acc_ref[...] += jnp.dot(x_ref[0, pl.ds(offsets[t], m), :], w_ref[t],
                                preferred_element_type=jnp.float32)

    def _epilogue():
        y = acc_ref[...] + b_ref[...]
        o_ref[0] = jnp.maximum(y, 0.0).astype(o_ref.dtype)

    if n_ci == 1:
        _epilogue()
    else:
        pl.when(pl.program_id(2) == pl.num_programs(2) - 1)(_epilogue)


def _conv_chunk(slab, w, bias, *, offsets, m_pad, tci, tco, n_ci, n_co,
                vmem_limit, flops_hint):
    """One pallas_call on a flattened row-chunk.

    slab: (N, L_pad, K_p)   w: (n_taps, K_p, Cout_p)   bias: (1, Cout_p)
    Returns (N, M_pad, Cout_p) float32.
    """
    N, L_pad, K_p = slab.shape
    n_taps, _, Cout_p = w.shape
    itemsize = jnp.dtype(slab.dtype).itemsize

    cost = pl.CostEstimate(
        flops=int(flops_hint),
        transcendentals=0,
        bytes_accessed=int(N * n_co * L_pad * K_p * itemsize      # acts (re-read per co tile)
                           + N * n_taps * K_p * Cout_p * itemsize  # weights
                           + N * m_pad * Cout_p * 4))              # output

    kernel = functools.partial(_conv_bn_relu_kernel,
                               offsets=offsets, m=m_pad, n_ci=n_ci)

    return pl.pallas_call(
        kernel,
        out_shape=jax.ShapeDtypeStruct((N, m_pad, Cout_p), jnp.float32),
        grid_spec=pltpu.PrefetchScalarGridSpec(
            num_scalar_prefetch=0,
            grid=(N, n_co, n_ci),
            in_specs=[
                pl.BlockSpec((1, L_pad, tci), lambda n, co, ci: (n, 0, ci)),
                pl.BlockSpec((n_taps, tci, tco), lambda n, co, ci: (0, ci, co)),
                pl.BlockSpec((1, tco), lambda n, co, ci: (0, co)),
            ],
            out_specs=pl.BlockSpec((1, m_pad, tco), lambda n, co, ci: (n, 0, co)),
            scratch_shapes=[pltpu.VMEM((m_pad, tco), jnp.float32)],
        ),
        compiler_params=pltpu.CompilerParams(
            dimension_semantics=("parallel", "parallel", "arbitrary"),
            vmem_limit_bytes=vmem_limit),
        cost_estimate=cost,
    )(slab, w, bias)


# ------------------------------ JAX wrapper ------------------------------------

@functools.partial(jax.jit, static_argnames=("stride", "padding", "compute_dtype"))
def basic_conv2d(x_nchw, conv_w, gamma, beta, running_mean, running_var, *,
                 stride=1, padding=1, eps=1e-3, compute_dtype=None):
    """BasicConv2d forward (inference-mode BN).

    x_nchw: (N, Cin, H, W)    conv_w: (Cout, Cin, KH, KW)   [PyTorch layouts]
    Returns (N, Cout, Hout, Wout) float32.
    """
    Cout, Cin, KH, KW = conv_w.shape
    N, _, H, W = x_nchw.shape
    Hp, Wp = H + 2 * padding, W + 2 * padding
    Hout = (Hp - KH) // stride + 1
    Wout = (Wp - KW) // stride + 1

    if compute_dtype is None:
        compute_dtype = _default_compute_dtype()
    cdtype = jnp.dtype(compute_dtype)
    itemsize = cdtype.itemsize

    # ---- fold BatchNorm (inference) into weight scale + per-channel bias.
    inv_std = jax.lax.rsqrt(running_var.astype(jnp.float32) + eps)
    scale = gamma.astype(jnp.float32) * inv_std
    bias = beta.astype(jnp.float32) - running_mean.astype(jnp.float32) * scale
    w_hwio = jnp.transpose(conv_w.astype(jnp.float32), (2, 3, 1, 0)) * scale  # (KH,KW,Cin,Cout)

    # ---- NCHW -> NHWC + spatial pad in compute dtype.
    x = jnp.transpose(x_nchw, (0, 2, 3, 1)).astype(cdtype)
    if padding:
        x = jnp.pad(x, ((0, 0), (padding, padding), (padding, padding), (0, 0)))

    # ---- choose GEMM formulation.
    if stride != 1:
        mode = "im2col"      # wrapper-side full im2col: K = KH*KW*Cin, 1 tap.
    elif Cin < 32:
        mode = "wcol"        # width-only im2col: K = KW*Cin, KH taps (tiny-K fix).
    else:
        mode = "slab"        # flat padded slab: K = Cin, KH*KW contiguous taps.

    if mode == "im2col":
        cols = []
        for dh in range(KH):
            for dw in range(KW):
                cols.append(x[:, dh:dh + (Hout - 1) * stride + 1:stride,
                              dw:dw + (Wout - 1) * stride + 1:stride, :])
        slab4 = jnp.concatenate(cols, axis=-1) if len(cols) > 1 else cols[0]
        w_k = w_hwio.reshape(1, KH * KW * Cin, Cout)
        n_taps, halo, Wc = 1, 0, Wout
        tap_offsets = (0,)
    elif mode == "wcol":
        cols = [x[:, :, dw:dw + Wout, :] for dw in range(KW)]
        slab4 = jnp.concatenate(cols, axis=-1) if KW > 1 else cols[0]
        w_k = w_hwio.reshape(KH, KW * Cin, Cout)
        n_taps, halo, Wc = KH, KH - 1, Wout
        tap_offsets = tuple(dh * Wout for dh in range(KH))
    else:
        slab4 = x                                           # (N, Hp, Wp, Cin)
        w_k = w_hwio.reshape(KH * KW, Cin, Cout)
        n_taps, halo, Wc = KH * KW, KH - 1, Wp
        # Tap starts with dw != 0 are sublane-misaligned; that costs a sublane
        # shift per tap, still far cheaper than a full window re-tile copy.
        tap_offsets = tuple(dh * Wp + dw for dh in range(KH) for dw in range(KW))

    K_total = slab4.shape[-1]

    # ---- K (reduction) tiling.
    if K_total <= 256:
        TCI, K_p = K_total, K_total
    else:
        TCI = 128
        K_p = _round_up(K_total, TCI)
    n_ci = K_p // TCI
    if K_p > K_total:
        slab4 = jnp.pad(slab4, ((0, 0), (0, 0), (0, 0), (0, K_p - K_total)))
        w_k = jnp.pad(w_k, ((0, 0), (0, K_p - K_total), (0, 0)))

    # ---- Cout padding (lane-dense output) and folded weights/bias.
    Cout_p = _round_up(Cout, 128)
    w_k = jnp.pad(w_k, ((0, 0), (0, 0), (0, Cout_p - Cout))).astype(cdtype)
    bias = jnp.pad(bias, (0, Cout_p - Cout)).reshape(1, Cout_p)

    # ---- generation-aware TCO / row-chunk sizing against the VMEM budget.
    phys_vmem = _tpu_vmem_capacity()
    cap = min(int(phys_vmem * 0.75), 100 << 20)      # ~48 MiB on v7x, ~96 MiB on v5e/v6e
    budget = cap - (6 << 20)                          # headroom for compiler scratch
    prefer_128 = "v5" in _device_kind()               # v5e MXU is 4x128x128

    tco_candidates = [Cout_p]                         # single co tile -> no act re-read
    if Cout_p % 256 == 0 and Cout_p > 256 and not prefer_128:
        tco_candidates.append(256)
    if Cout_p > 128:
        tco_candidates.append(128)

    max_off = tap_offsets[-1]

    def footprint(tco, th):
        m_pad = _round_up(th * Wc, 8)
        l_pad = _round_up(max_off + m_pad, 8)
        x_blk = l_pad * TCI * itemsize
        w_blk = n_taps * TCI * tco * itemsize
        o_blk = m_pad * tco * 4
        return 2 * (x_blk + w_blk + tco * 4) + 2 * o_blk + m_pad * tco * 4

    TCO, TH = None, None
    for tco in tco_candidates:
        th = Hout
        while th > 8 and footprint(tco, th) > budget:
            th = max(8, (th + 1) // 2)
        if footprint(tco, th) <= budget:
            TCO, TH = tco, th
            break
    if TCO is None:                                   # pathological fallback
        TCO, TH = tco_candidates[-1], min(8, Hout)
    n_co = Cout_p // TCO

    # ---- wrapper-level output-row chunking (bounds acc/output VMEM).
    flops_total = 2 * N * Hout * Wout * KH * KW * Cin * Cout
    chunks = []
    r0 = 0
    while r0 < Hout:
        th = min(TH, Hout - r0)
        m = th * Wc
        m_pad = _round_up(m, 8)
        l_pad = _round_up(max_off + m_pad, 8)
        piece = slab4[:, r0:r0 + th + halo]                    # (N, th+halo, Wc, K_p)
        piece = piece.reshape(N, (th + halo) * Wc, K_p)
        if l_pad > piece.shape[1]:
            piece = jnp.pad(piece, ((0, 0), (0, l_pad - piece.shape[1]), (0, 0)))
        vmem_limit = int(min(cap, max(footprint(TCO, th) + (4 << 20), 32 << 20)))
        out_c = _conv_chunk(piece, w_k, bias,
                            offsets=tap_offsets, m_pad=m_pad, tci=TCI, tco=TCO,
                            n_ci=n_ci, n_co=n_co, vmem_limit=vmem_limit,
                            flops_hint=max(1, flops_total * th // Hout))
        chunks.append(out_c[:, :m, :].reshape(N, th, Wc, Cout_p))
        r0 += th
    out = chunks[0] if len(chunks) == 1 else jnp.concatenate(chunks, axis=1)

    out = out[:, :, :Wout, :Cout]                              # drop junk cols / padded chans
    return jnp.transpose(out, (0, 3, 1, 2))                    # NHWC -> NCHW


# ------------------------------ reference -------------------------------------

def _reference(x_nchw, conv_w, gamma, beta, mean, var, *, stride=1, padding=1, eps=1e-3):
    y = jax.lax.conv_general_dilated(
        x_nchw, conv_w, window_strides=(stride, stride),
        padding=[(padding, padding), (padding, padding)],
        dimension_numbers=("NCHW", "OIHW", "NCHW"))
    g = gamma.reshape(1, -1, 1, 1)
    b = beta.reshape(1, -1, 1, 1)
    m = mean.reshape(1, -1, 1, 1)
    v = var.reshape(1, -1, 1, 1)
    y = (y - m) / jnp.sqrt(v + eps) * g + b
    return jnp.maximum(y, 0.0)


# -------------------------------- main -----------------------------------------

if __name__ == "__main__":
    key = jax.random.PRNGKey(0)
    k_x, k_w, k_g, k_b, k_m, k_v, k_x2, k_w2 = jax.random.split(key, 8)

    N, Cin, H, W = 2, 4, 16, 16
    Cout, KH, KW = 8, 3, 3

    x = jax.random.normal(k_x, (N, Cin, H, W), dtype=jnp.float32)
    conv_w = jax.random.normal(k_w, (Cout, Cin, KH, KW), dtype=jnp.float32) * 0.1
    gamma = 0.5 + jax.random.uniform(k_g, (Cout,), dtype=jnp.float32)
    beta = jax.random.normal(k_b, (Cout,), dtype=jnp.float32) * 0.1
    running_mean = jax.random.normal(k_m, (Cout,), dtype=jnp.float32) * 0.1
    running_var = 1.0 + jnp.abs(jax.random.normal(k_v, (Cout,), dtype=jnp.float32)) * 0.1

    # --- stride=1, small-Cin path (width-im2col), f32 then bf16 compute.
    ref = _reference(x, conv_w, gamma, beta, running_mean, running_var,
                     stride=1, padding=1)
    out = basic_conv2d(x, conv_w, gamma, beta, running_mean, running_var,
                       stride=1, padding=1, compute_dtype=jnp.float32)
    out = jax.block_until_ready(out)
    assert out.shape == (N, Cout, H, W), out.shape
    assert jnp.allclose(out, ref, atol=2e-4, rtol=2e-4), \
        float(jnp.max(jnp.abs(out - ref)))

    out_bf16 = basic_conv2d(x, conv_w, gamma, beta, running_mean, running_var,
                            stride=1, padding=1, compute_dtype=jnp.bfloat16)
    out_bf16 = jax.block_until_ready(out_bf16)
    assert out_bf16.shape == (N, Cout, H, W), out_bf16.shape
    assert jnp.allclose(out_bf16, ref, atol=5e-2, rtol=5e-2), \
        float(jnp.max(jnp.abs(out_bf16 - ref)))

    # --- stride=2 path (wrapper-side im2col mode).
    ref2 = _reference(x, conv_w, gamma, beta, running_mean, running_var,
                      stride=2, padding=1)
    out2 = basic_conv2d(x, conv_w, gamma, beta, running_mean, running_var,
                        stride=2, padding=1, compute_dtype=jnp.float32)
    out2 = jax.block_until_ready(out2)
    assert out2.shape == ref2.shape, (out2.shape, ref2.shape)
    assert jnp.allclose(out2, ref2, atol=2e-4, rtol=2e-4), \
        float(jnp.max(jnp.abs(out2 - ref2)))

    # --- larger-Cin layer (flat-slab implicit-GEMM mode).
    Cin2, Cout2 = 64, 32
    x2 = jax.random.normal(k_x2, (1, Cin2, 8, 8), dtype=jnp.float32)
    w2 = jax.random.normal(k_w2, (Cout2, Cin2, 3, 3), dtype=jnp.float32) * 0.05
    g2 = jnp.ones((Cout2,), jnp.float32)
    b2 = jnp.zeros((Cout2,), jnp.float32)
    m2 = jnp.zeros((Cout2,), jnp.float32)
    v2 = jnp.ones((Cout2,), jnp.float32)
    ref3 = _reference(x2, w2, g2, b2, m2, v2, stride=1, padding=1)
    out3 = basic_conv2d(x2, w2, g2, b2, m2, v2, stride=1, padding=1,
                        compute_dtype=jnp.float32)
    out3 = jax.block_until_ready(out3)
    assert out3.shape == ref3.shape, (out3.shape, ref3.shape)
    assert jnp.allclose(out3, ref3, atol=3e-4, rtol=3e-4), \
        float(jnp.max(jnp.abs(out3 - ref3)))

    print("KERNEL_OK")
</pallas_src>

<mosaic_0001>
module attributes {stable_mosaic.version = 11 : i64} {
  func.func @_conv_bn_relu_kernel(%arg0: i32, %arg1: i32, %arg2: i32, %arg3: memref<1x288x12xf32, #tpu.memory_space<vmem>>, %arg4: memref<3x12x128xf32, #tpu.memory_space<vmem>>, %arg5: memref<1x128xf32, #tpu.memory_space<vmem>>, %arg6: memref<1x256x128xf32, #tpu.memory_space<vmem>>, %arg7: memref<256x128xf32, #tpu.memory_space<vmem>>) attributes {dimension_semantics = [#tpu.dimension_semantics<parallel>, #tpu.dimension_semantics<parallel>, #tpu.dimension_semantics<arbitrary>], iteration_bounds = array<i64: 2, 1, 1>, scalar_prefetch = 0 : i64, scratch_operands = 1 : i64, tpu.core_type = #tpu.core_type<tc>, window_params = [{transform_indices = @transform_0, window_bounds = array<i64: 1, 288, 12>}, {transform_indices = @transform_1, window_bounds = array<i64: 3, 12, 128>}, {transform_indices = @transform_2, window_bounds = array<i64: 1, 128>}, {transform_indices = @transform_3, window_bounds = array<i64: 1, 256, 128>}]} {
    %c0 = arith.constant 0 : index
    %c0_0 = arith.constant 0 : index
    %c0_1 = arith.constant 0 : index
    %0 = vector.load %arg3[%c0, %c0_0, %c0_1] : memref<1x288x12xf32, #tpu.memory_space<vmem>>, vector<1x256x12xf32>
    %1 = vector.shape_cast %0 : vector<1x256x12xf32> to vector<256x12xf32>
    %c0_2 = arith.constant 0 : index
    %c0_3 = arith.constant 0 : index
    %c0_4 = arith.constant 0 : index
    %2 = vector.load %arg4[%c0_2, %c0_3, %c0_4] : memref<3x12x128xf32, #tpu.memory_space<vmem>>, vector<1x12x128xf32>
    %3 = vector.shape_cast %2 : vector<1x12x128xf32> to vector<12x128xf32>
    %cst = arith.constant dense<0.000000e+00> : vector<256x128xf32>
    %4 = tpu.matmul %1, %3, %cst {dimension_numbers = #tpu.dot_dimension_numbers<[1], [0], [0], [1], [0, 0, 1, 1], [], []>} : vector<256x12xf32>, vector<12x128xf32>, vector<256x128xf32> -> vector<256x128xf32>
    %c0_5 = arith.constant 0 : index
    %c0_6 = arith.constant 0 : index
    %5 = vector.load %arg7[%c0_5, %c0_6] : memref<256x128xf32, #tpu.memory_space<vmem>>, vector<256x128xf32>
    tpu.vector_store %arg7[%c0_5, %c0_6], %4 {strides = array<i32>} : memref<256x128xf32, #tpu.memory_space<vmem>>, vector<256x128xf32>,
    %c0_7 = arith.constant 0 : index
    %c0_8 = arith.constant 0 : index
    %6 = vector.load %arg7[%c0_7, %c0_8] : memref<256x128xf32, #tpu.memory_space<vmem>>, vector<256x128xf32>
    %c0_9 = arith.constant 0 : index
    %c16 = arith.constant 16 : index
    %c0_10 = arith.constant 0 : index
    %7 = vector.load %arg3[%c0_9, %c16, %c0_10] : memref<1x288x12xf32, #tpu.memory_space<vmem>>, vector<1x256x12xf32>
    %8 = vector.shape_cast %7 : vector<1x256x12xf32> to vector<256x12xf32>
    %c1 = arith.constant 1 : index
    %c0_11 = arith.constant 0 : index
    %c0_12 = arith.constant 0 : index
    %9 = vector.load %arg4[%c1, %c0_11, %c0_12] : memref<3x12x128xf32, #tpu.memory_space<vmem>>, vector<1x12x128xf32>
    %10 = vector.shape_cast %9 : vector<1x12x128xf32> to vector<12x128xf32>
    %cst_13 = arith.constant dense<0.000000e+00> : vector<256x128xf32>
    %11 = tpu.matmul %8, %10, %cst_13 {dimension_numbers = #tpu.dot_dimension_numbers<[1], [0], [0], [1], [0, 0, 1, 1], [], []>} : vector<256x12xf32>, vector<12x128xf32>, vector<256x128xf32> -> vector<256x128xf32>
    %12 = arith.addf %6, %11 : vector<256x128xf32>
    %c0_14 = arith.constant 0 : index
    %c0_15 = arith.constant 0 : index
    %13 = vector.load %arg7[%c0_14, %c0_15] : memref<256x128xf32, #tpu.memory_space<vmem>>, vector<256x128xf32>
    tpu.vector_store %arg7[%c0_14, %c0_15], %12 {strides = array<i32>} : memref<256x128xf32, #tpu.memory_space<vmem>>, vector<256x128xf32>,
    %c0_16 = arith.constant 0 : index
    %c0_17 = arith.constant 0 : index
    %14 = vector.load %arg7[%c0_16, %c0_17] : memref<256x128xf32, #tpu.memory_space<vmem>>, vector<256x128xf32>
    %c0_18 = arith.constant 0 : index
    %c32 = arith.constant 32 : index
    %c0_19 = arith.constant 0 : index
    %15 = vector.load %arg3[%c0_18, %c32, %c0_19] : memref<1x288x12xf32, #tpu.memory_space<vmem>>, vector<1x256x12xf32>
    %16 = vector.shape_cast %15 : vector<1x256x12xf32> to vector<256x12xf32>
    %c2 = arith.constant 2 : index
    %c0_20 = arith.constant 0 : index
    %c0_21 = arith.constant 0 : index
    %17 = vector.load %arg4[%c2, %c0_20, %c0_21] : memref<3x12x128xf32, #tpu.memory_space<vmem>>, vector<1x12x128xf32>
    %18 = vector.shape_cast %17 : vector<1x12x128xf32> to vector<12x128xf32>
    %cst_22 = arith.constant dense<0.000000e+00> : vector<256x128xf32>
    %19 = tpu.matmul %16, %18, %cst_22 {dimension_numbers = #tpu.dot_dimension_numbers<[1], [0], [0], [1], [0, 0, 1, 1], [], []>} : vector<256x12xf32>, vector<12x128xf32>, vector<256x128xf32> -> vector<256x128xf32>
    %20 = arith.addf %14, %19 : vector<256x128xf32>
    %c0_23 = arith.constant 0 : index
    %c0_24 = arith.constant 0 : index
    %21 = vector.load %arg7[%c0_23, %c0_24] : memref<256x128xf32, #tpu.memory_space<vmem>>, vector<256x128xf32>
    tpu.vector_store %arg7[%c0_23, %c0_24], %20 {strides = array<i32>} : memref<256x128xf32, #tpu.memory_space<vmem>>, vector<256x128xf32>,
    %c0_25 = arith.constant 0 : index
    %c0_26 = arith.constant 0 : index
    %22 = vector.load %arg7[%c0_25, %c0_26] : memref<256x128xf32, #tpu.memory_space<vmem>>, vector<256x128xf32>
    %c0_27 = arith.constant 0 : index
    %c0_28 = arith.constant 0 : index
    %23 = vector.load %arg5[%c0_27, %c0_28] : memref<1x128xf32, #tpu.memory_space<vmem>>, vector<1x128xf32>
    %24 = vector.broadcast %23 : vector<1x128xf32> to vector<256x128xf32>
    %25 = arith.addf %22, %24 : vector<256x128xf32>
    %cst_29 = arith.constant 0.000000e+00 : f32
    %26 = vector.broadcast %cst_29 : f32 to vector<256x128xf32>
    %27 = arith.maximumf %25, %26 : vector<256x128xf32>
    %c0_30 = arith.constant 0 : index
    %c0_31 = arith.constant 0 : index
    %c0_32 = arith.constant 0 : index
    %28 = vector.load %arg6[%c0_30, %c0_31, %c0_32] : memref<1x256x128xf32, #tpu.memory_space<vmem>>, vector<1x256x128xf32>
    %29 = vector.shape_cast %28 : vector<1x256x128xf32> to vector<256x128xf32>
    %30 = vector.shape_cast %27 : vector<256x128xf32> to vector<1x256x128xf32>
    tpu.vector_store %arg6[%c0_30, %c0_31, %c0_32], %30 {strides = array<i32>} : memref<1x256x128xf32, #tpu.memory_space<vmem>>, vector<1x256x128xf32>,
    return
  }
  func.func @transform_0(%arg0: i32, %arg1: i32, %arg2: i32) -> (i32, i32, i32) {
    %c0_i32 = arith.constant 0 : i32
    %c0_i32_0 = arith.constant 0 : i32
    return %arg0, %c0_i32, %arg2 : i32, i32, i32
  }
  func.func @transform_1(%arg0: i32, %arg1: i32, %arg2: i32) -> (i32, i32, i32) {
    %c0_i32 = arith.constant 0 : i32
    %c0_i32_0 = arith.constant 0 : i32
    return %c0_i32, %arg2, %arg1 : i32, i32, i32
  }
  func.func @transform_2(%arg0: i32, %arg1: i32, %arg2: i32) -> (i32, i32) {
    %c0_i32 = arith.constant 0 : i32
    %c0_i32_0 = arith.constant 0 : i32
    return %c0_i32, %arg1 : i32, i32
  }
  func.func @transform_3(%arg0: i32, %arg1: i32, %arg2: i32) -> (i32, i32, i32) {
    %c0_i32 = arith.constant 0 : i32
    %c0_i32_0 = arith.constant 0 : i32
    return %arg0, %c0_i32, %arg1 : i32, i32, i32
  }
}

</mosaic_0001>

<bundles_post_ra>
// kernel: basic_conv2d.1
= control target key start
LH: loop header
LB: loop body
LE: loop exit
PB: predicated region body
PF: predicated region fallthrough
CT: control target
= control target key end

     0   :  { %s1663_s12 = smov 0   ;;  %s1665_s13 = smov 0   ;;  %s2035_s0 = inlined_call_operand.vmem [shape: f32[2,288,12], index: 0, kind: input, shape index: {}]   ;;  %s2036_s1 = inlined_call_operand.vmem [shape: f32[3,12,128], index: 1, kind: input, shape index: {}]   ;;  %s2037_s2 = inlined_call_operand.vmem [shape: f32[1,128], index: 2, kind: input, shape index: {}]   ;;  %s2038_s3 = inlined_call_operand.vmem [shape: f32[2,256,128], index: 3, kind: output, shape index: {}]  }
   0x1   :  { %s1667_s14 = smov 0  }
   0x2 LB: > { %s32_s15 = sadd.s32 1, %s1637_s13  ;;  %p1477_p0 = scmp.ge.s32.totalorder %s1641_s14, 1  ;;  %s1641_s14 = sphi %s1667_s14, %s13_s14   ;;  %s1637_s13 = sphi %s1665_s13, %s2040_s13   ;;  %s1633_s12 = sphi %s1663_s12, %s2039_s12  }
   0x3   : > { %p34_p1 = scmp.ge.s32.totalorder %s32_s15, 2  ;;  %p187_p2 = scmp.lt.s32.totalorder %s1641_s14, 3 }
   0x5   : > { %s2042_s15 = smov (%p34_p1, %s32_s15), 0  ;;  %p188_p3 = pnand %p1477_p0, %p187_p2 }
   0x6   : > { %p228_p4 = scmp.lt.s32.totalorder (!%p188_p3), %s1633_s12, 1 }
   0x7   : > { %191 = sbr.rel (%p188_p3) target bundleno = 342 (0x156), region = 32 }
   0xc   : > { %v289_v0 = vld [vmem:[%s2036_s1 + $0x8] sm:$0xf]  ;;  %vm387_vm0 = vcmask 1043456   ;;  %v288_v2 = vld [vmem:[%s2036_s1] sm:$0xff]  ;;  %v1515_v4 = vld [vmem:[%s2036_s1 + $0x18] sm:$0xf] }
   0xd   : > { %v1550_v1 = vld [vmem:[%s2036_s1 + $0x28] sm:$0xf]  ;;  %1587 = vmatpush.msk.msra.mxu3 %vm387_vm0, %v289_v0  ;;  %v1549_v3 = vld [vmem:[%s2036_s1 + $0x20] sm:$0xff]  ;;  %1481 = vmatpush.msk.msra.mxu0 %vm387_vm0, %v289_v0  ;;  %v1514_v5 = vld [vmem:[%s2036_s1 + $0x10] sm:$0xff]  ;;  %s2044_s12 = smov (!%p228_p4, %s1633_s12), 1  ;;  %vm290_vm1 = vcmask 97280  }
   0xe   : > { %1551 = vmatpush.msk.msra.mxu2 %vm387_vm0, %v1550_v1  ;;  %1516 = vmatpush.msk.msra.mxu1 %vm387_vm0, %v1515_v4  ;;  %s1593_s28 = smul.u32 288, %s2044_s12  ;;  %v1855_v40 = vld [vmem:[%s2037_s2] ss:$0 sm:$0xff]  ;;  %s1586_s7 = sshll.u32 %s2044_s12, 8 }
   0xf   : > { %1588 = vmatpush.msra.mxu3 %v288_v2  ;;  %406 = vmatpush.msra.mxu0 %v288_v2  ;;  %s1867_s10 = scalar_lea.vmem %s2038_s3, %s1586_s7 }
  0x10   : > { %1060 = vmatpush.msra.mxu2 %v1549_v3  ;;  %717 = vmatpush.msra.mxu1 %v1514_v5  ;;  %s1710_s4 = scalar_lea.vmem %s2035_s0, %s1593_s28 }
  0x11   : > { %1589 = vmatpush.msk.msrb.mxu3 %vm387_vm0, %v1515_v4  ;;  %v1713_v6 = vld [vmem:[%s1710_s4 + $0xc0] sm:$0xff]  ;;  %v568_v9 = vld [vmem:[%s1710_s4 + $0x10] sm:$0xff]  ;;  %v1725_v10 = vld [vmem:[%s1710_s4 + $0xc8] sm:$0xff] }
  0x12   : > { %v911_v7 = vld [vmem:[%s1710_s4 + $0x20] sm:$0xff]  ;;  %1506 = vmatmul.msk.f32.vlgmr.msra.gmra.mxu3 %vm290_vm1, %v1713_v6  ;;  %1517 = vmatmul.msk.f32.vlgmr.msra.gmra.mxu1 %vm290_vm1, %v568_v9  ;;  %v912_v11 = vld [vmem:[%s1710_s4 + $0x28] sm:$0xff]  ;;  %v569_v13 = vld [vmem:[%s1710_s4 + $0x18] sm:$0xff] }
  0x13   : > { %1590 = vmatpush.msrb.mxu3 %v1514_v5  ;;  %v256_v8 = vld [vmem:[%s1710_s4] sm:$0xff]  ;;  %1552 = vmatmul.msk.f32.vlgmr.msra.gmra.mxu2 %vm290_vm1, %v911_v7  ;;  %v257_v12 = vld [vmem:[%s1710_s4 + $0x8] sm:$0xff]  ;;  %v1736_v14 = vld [vmem:[%s1710_s4 + $0xd0] sm:$0xff] }
  0x14   : > { %1482 = vmatmul.msk.f32.vlgmr.msra.gmra.mxu0 %vm290_vm1, %v256_v8  ;;  %v913_v15 = vld [vmem:[%s1710_s4 + $0x30] sm:$0xff]  ;;  %v1745_v16 = vld [vmem:[%s1710_s4 + $0xd8] sm:$0xff]  ;;  %v1754_v18 = vld [vmem:[%s1710_s4 + $0xe0] sm:$0xff] }
  0x15   : > { %1591 = vmatpush.msk.msra.mxu3 %vm387_vm0, %v1550_v1  ;;  %v914_v17 = vld [vmem:[%s1710_s4 + $0x38] sm:$0xff]  ;;  %v915_v19 = vld [vmem:[%s1710_s4 + $0x40] sm:$0xff]  ;;  %v1763_v20 = vld [vmem:[%s1710_s4 + $0xe8] sm:$0xff] }
  0x16   : > { %v916_v21 = vld [vmem:[%s1710_s4 + $0x48] sm:$0xff]  ;;  %v1772_v22 = vld [vmem:[%s1710_s4 + $0xf0] sm:$0xff]  ;;  %v1781_v24 = vld [vmem:[%s1710_s4 + $0xf8] sm:$0xff] }
  0x17   : > { %1592 = vmatpush.msra.mxu3 %v1549_v3  ;;  %v917_v23 = vld [vmem:[%s1710_s4 + $0x50] sm:$0xff]  ;;  %v918_v25 = vld [vmem:[%s1710_s4 + $0x58] sm:$0xff]  ;;  %v919_v26 = vld [vmem:[%s1710_s4 + $0x60] sm:$0xff] }
  0x18   : > { %v920_v27 = vld [vmem:[%s1710_s4 + $0x68] sm:$0xff]  ;;  %v921_v28 = vld [vmem:[%s1710_s4 + $0x70] sm:$0xff]  ;;  %v922_v29 = vld [vmem:[%s1710_s4 + $0x78] sm:$0xff] }
  0x19   : > { %v923_v30 = vld [vmem:[%s1710_s4 + $0x80] sm:$0xff]  ;;  %v924_v31 = vld [vmem:[%s1710_s4 + $0x88] sm:$0xff]  ;;  %v925_v33 = vld [vmem:[%s1710_s4 + $0x90] sm:$0xff] }
  0x1a   : > { %1507 = vmatmul.msk.f32.gmra.mxu3 %vm290_vm1, %v1725_v10  ;;  %1518 = vmatmul.msk.f32.gmra.mxu1 %vm290_vm1, %v569_v13  ;;  %v1826_v32 = vld [vmem:[%s1710_s4 + $0x100] sm:$0xff]  ;;  %v1835_v34 = vld [vmem:[%s1710_s4 + $0x108] sm:$0xff]  ;;  %v926_v35 = vld [vmem:[%s1710_s4 + $0x98] sm:$0xff] }
  0x1b   : > { %1553 = vmatmul.msk.f32.gmra.mxu2 %vm290_vm1, %v912_v11  ;;  %v1844_v36 = vld [vmem:[%s1710_s4 + $0xa0] sm:$0xff]  ;;  %v1861_v44 = vld [vmem:[%s1710_s4 + $0xa8] sm:$0xff]  ;;  %v929_v53 = vld [vmem:[%s1710_s4 + $0xb0] sm:$0xff] }
  0x1c   : > { %1483 = vmatmul.msk.f32.gmra.mxu0 %vm290_vm1, %v257_v12  ;;  %v930_v62 = vld [vmem:[%s1710_s4 + $0xb8] sm:$0xff] }
  0x22   : > { %1508 = vmatmul.msk.f32.gmra.mxu3 %vm290_vm1, %v1736_v14  ;;  %1519 = vmatmul.msk.f32.gmra.mxu1 %vm290_vm1, %v911_v7 }
  0x23   : > { %1554 = vmatmul.msk.f32.gmra.mxu2 %vm290_vm1, %v913_v15 }
  0x24   : > { %1484 = vmatmul.msk.f32.gmra.mxu0 %vm290_vm1, %v568_v9 }
  0x2a   : > { %1509 = vmatmul.msk.f32.gmra.mxu3 %vm290_vm1, %v1745_v16  ;;  %1520 = vmatmul.msk.f32.gmra.mxu1 %vm290_vm1, %v912_v11 }
  0x2b   : > { %1555 = vmatmul.msk.f32.gmra.mxu2 %vm290_vm1, %v914_v17 }
  0x2c   : > { %1485 = vmatmul.msk.f32.gmra.mxu0 %vm290_vm1, %v569_v13 }
  0x32   : > { %1510 = vmatmul.msk.f32.gmra.mxu3 %vm290_vm1, %v1754_v18  ;;  %1521 = vmatmul.msk.f32.gmra.mxu1 %vm290_vm1, %v913_v15 }
  0x33   : > { %1556 = vmatmul.msk.f32.gmra.mxu2 %vm290_vm1, %v915_v19 }
  0x34   : > { %1486 = vmatmul.msk.f32.gmra.mxu0 %vm290_vm1, %v911_v7 }
  0x3a   : > { %1511 = vmatmul.msk.f32.gmra.mxu3 %vm290_vm1, %v1763_v20  ;;  %1522 = vmatmul.msk.f32.gmra.mxu1 %vm290_vm1, %v914_v17 }
  0x3b   : > { %1557 = vmatmul.msk.f32.gmra.mxu2 %vm290_vm1, %v916_v21 }
  0x3c   : > { %1487 = vmatmul.msk.f32.gmra.mxu0 %vm290_vm1, %v912_v11 }
  0x42   : > { %1512 = vmatmul.msk.f32.gmra.mxu3 %vm290_vm1, %v1772_v22  ;;  %1523 = vmatmul.msk.f32.gmra.mxu1 %vm290_vm1, %v915_v19 }
  0x43   : > { %1558 = vmatmul.msk.f32.gmra.mxu2 %vm290_vm1, %v917_v23 }
  0x44   : > { %1488 = vmatmul.msk.f32.gmra.mxu0 %vm290_vm1, %v913_v15 }
  0x4a   : > { %1513 = vmatmul.msk.f32.gmra.mxu3 %vm290_vm1, %v1781_v24  ;;  %1524 = vmatmul.msk.f32.gmra.mxu1 %vm290_vm1, %v916_v21 }
  0x4b   : > { %1559 = vmatmul.msk.f32.gmra.mxu2 %vm290_vm1, %v918_v25 }
  0x4c   : > { %1489 = vmatmul.msk.f32.gmra.mxu0 %vm290_vm1, %v914_v17 }
  0x52   : > { %1541 = vmatmul.msk.f32.vlgmr.msrb.gmra.mxu3 %vm290_vm1, %v1736_v14  ;;  %1525 = vmatmul.msk.f32.gmra.mxu1 %vm290_vm1, %v917_v23 }
  0x53   : > { %1560 = vmatmul.msk.f32.gmra.mxu2 %vm290_vm1, %v919_v26 }
  0x54   : > { %1490 = vmatmul.msk.f32.gmra.mxu0 %vm290_vm1, %v915_v19 }
  0x5a   : > { %1542 = vmatmul.msk.f32.gmra.mxu3 %vm290_vm1, %v1745_v16  ;;  %1526 = vmatmul.msk.f32.gmra.mxu1 %vm290_vm1, %v918_v25 }
  0x5b   : > { %1561 = vmatmul.msk.f32.gmra.mxu2 %vm290_vm1, %v920_v27 }
  0x5c   : > { %1491 = vmatmul.msk.f32.gmra.mxu0 %vm290_vm1, %v916_v21 }
  0x62   : > { %1543 = vmatmul.msk.f32.gmra.mxu3 %vm290_vm1, %v1754_v18  ;;  %1527 = vmatmul.msk.f32.gmra.mxu1 %vm290_vm1, %v919_v26 }
  0x63   : > { %1562 = vmatmul.msk.f32.gmra.mxu2 %vm290_vm1, %v921_v28 }
  0x64   : > { %1492 = vmatmul.msk.f32.gmra.mxu0 %vm290_vm1, %v917_v23 }
  0x6a   : > { %1544 = vmatmul.msk.f32.gmra.mxu3 %vm290_vm1, %v1763_v20  ;;  %1528 = vmatmul.msk.f32.gmra.mxu1 %vm290_vm1, %v920_v27 }
  0x6b   : > { %1563 = vmatmul.msk.f32.gmra.mxu2 %vm290_vm1, %v922_v29 }
  0x6c   : > { %1493 = vmatmul.msk.f32.gmra.mxu0 %vm290_vm1, %v918_v25 }
  0x72   : > { %1545 = vmatmul.msk.f32.gmra.mxu3 %vm290_vm1, %v1772_v22  ;;  %1529 = vmatmul.msk.f32.gmra.mxu1 %vm290_vm1, %v921_v28 }
  0x73   : > { %1564 = vmatmul.msk.f32.gmra.mxu2 %vm290_vm1, %v923_v30 }
  0x74   : > { %1494 = vmatmul.msk.f32.gmra.mxu0 %vm290_vm1, %v919_v26 }
  0x7a   : > { %1546 = vmatmul.msk.f32.gmra.mxu3 %vm290_vm1, %v1781_v24  ;;  %1530 = vmatmul.msk.f32.gmra.mxu1 %vm290_vm1, %v922_v29 }
  0x7b   : > { %1565 = vmatmul.msk.f32.gmra.mxu2 %vm290_vm1, %v924_v31 }
  0x7c   : > { %1495 = vmatmul.msk.f32.gmra.mxu0 %vm290_vm1, %v920_v27  ;;  %v941_v27 = vld [vmem:[%s1710_s4 + $0x110] sm:$0xff] }
  0x82   : > { %1547 = vmatmul.msk.f32.gmra.mxu3 %vm290_vm1, %v1826_v32  ;;  %1531 = vmatmul.msk.f32.gmra.mxu1 %vm290_vm1, %v923_v30 }
  0x83   : > { %1566 = vmatmul.msk.f32.gmra.mxu2 %vm290_vm1, %v925_v33 }
  0x84   : > { %1496 = vmatmul.msk.f32.gmra.mxu0 %vm290_vm1, %v921_v28 }
  0x8a   : > { %1548 = vmatmul.msk.f32.gmra.mxu3 %vm290_vm1, %v1835_v34  ;;  %1532 = vmatmul.msk.f32.gmra.mxu1 %vm290_vm1, %v924_v31 }
  0x8b   : > { %1567 = vmatmul.msk.f32.gmra.mxu2 %vm290_vm1, %v926_v35 }
  0x8c   : > { %1497 = vmatmul.msk.f32.gmra.mxu0 %vm290_vm1, %v922_v29 }
  0x8f   : > { %v719_v38 = vpop.f32.mrf.mxu1 }
  0x91   : > { %v408_v37 = vpop.f32.mrf.mxu0 }
  0x92   : > { %1576 = vmatmul.msk.f32.vlgmr.msra.gmra.mxu3 %vm290_vm1, %v1754_v18  ;;  %v815_v39 = vadd.f32 %v719_v38, %v408_v37  ;;  %1533 = vmatmul.msk.f32.gmra.mxu1 %vm290_vm1, %v925_v33 }
  0x93   : > { %1568 = vmatmul.msk.f32.gmra.mxu2 %vm290_vm1, %v1844_v36 }
  0x94   : > { %1498 = vmatmul.msk.f32.gmra.mxu0 %vm290_vm1, %v923_v30 }
  0x95   : > { %v1857_v41 = vpop.f32.mrf.mxu3 }
  0x96   : > { %v1062_v42 = vpop.f32.mrf.mxu2 }
  0x97   : > { %v1158_v43 = vadd.f32 %v1062_v42, %v815_v39  ;;  %v722_v47 = vpop.f32.mrf.mxu1 }
  0x99   : > { %v1258_v45 = vadd.f32 %v1855_v40, %v1158_v43  ;;  %v411_v46 = vpop.f32.mrf.mxu0 }
  0x9a   : > { %1577 = vmatmul.msk.f32.gmra.mxu3 %vm290_vm1, %v1763_v20  ;;  %v816_v49 = vadd.f32 %v722_v47, %v411_v46  ;;  %1534 = vmatmul.msk.f32.gmra.mxu1 %vm290_vm1, %v926_v35 }
  0x9b   : > { %v1290_v48 = vmax.f32 %v1258_v45, 0.0  ;;  %1569 = vmatmul.msk.f32.gmra.mxu2 %vm290_vm1, %v1861_v44 }
  0x9c   : > { %1499 = vmatmul.msk.f32.gmra.mxu0 %vm290_vm1, %v924_v31 }
  0x9d   : > { %1322 = vst [vmem:[%s1867_s10] sm:$0xff] %v1290_v48  ;;  %v1876_v50 = vpop.f32.mrf.mxu3 }
  0x9e   : > { %v1065_v51 = vpop.f32.mrf.mxu2 }
  0x9f   : > { %v1159_v52 = vadd.f32 %v1065_v51, %v816_v49  ;;  %v725_v56 = vpop.f32.mrf.mxu1 }
  0xa1   : > { %v1259_v54 = vadd.f32 %v1855_v40, %v1159_v52  ;;  %v414_v55 = vpop.f32.mrf.mxu0 }
  0xa2   : > { %1578 = vmatmul.msk.f32.gmra.mxu3 %vm290_vm1, %v1772_v22  ;;  %v817_v58 = vadd.f32 %v725_v56, %v414_v55  ;;  %1535 = vmatmul.msk.f32.gmra.mxu1 %vm290_vm1, %v1844_v36 }
  0xa3   : > { %v1291_v57 = vmax.f32 %v1259_v54, 0.0  ;;  %1570 = vmatmul.msk.f32.gmra.mxu2 %vm290_vm1, %v929_v53 }
  0xa4   : > { %1500 = vmatmul.msk.f32.gmra.mxu0 %vm290_vm1, %v925_v33 }
  0xa5   : > { %1323 = vst [vmem:[%s1867_s10 + $0x8] sm:$0xff] %v1291_v57  ;;  %v1887_v59 = vpop.f32.mrf.mxu3 }
  0xa6   : > { %v1068_v60 = vpop.f32.mrf.mxu2 }
  0xa7   : > { %v1160_v61 = vadd.f32 %v1068_v60, %v817_v58  ;;  %v728_v1 = vpop.f32.mrf.mxu1 }
  0xa9   : > { %v1260_v63 = vadd.f32 %v1855_v40, %v1160_v61  ;;  %v417_v0 = vpop.f32.mrf.mxu0 }
  0xaa   : > { %1579 = vmatmul.msk.f32.gmra.mxu3 %vm290_vm1, %v1781_v24  ;;  %v818_v3 = vadd.f32 %v728_v1, %v417_v0  ;;  %1536 = vmatmul.msk.f32.gmra.mxu1 %vm290_vm1, %v1861_v44 }
  0xab   : > { %v1292_v2 = vmax.f32 %v1260_v63, 0.0  ;;  %1571 = vmatmul.msk.f32.gmra.mxu2 %vm290_vm1, %v930_v62 }
  0xac   : > { %1501 = vmatmul.msk.f32.gmra.mxu0 %vm290_vm1, %v926_v35 }
  0xad   : > { %1324 = vst [vmem:[%s1867_s10 + $0x10] sm:$0xff] %v1292_v2  ;;  %v1898_v4 = vpop.f32.mrf.mxu3 }
  0xae   : > { %v1071_v5 = vpop.f32.mrf.mxu2 }
  0xaf   : > { %v1161_v7 = vadd.f32 %v1071_v5, %v818_v3  ;;  %v731_v11 = vpop.f32.mrf.mxu1 }
  0xb1   : > { %v1261_v8 = vadd.f32 %v1855_v40, %v1161_v7  ;;  %v420_v9 = vpop.f32.mrf.mxu0 }
  0xb2   : > { %1580 = vmatmul.msk.f32.gmra.mxu3 %vm290_vm1, %v1826_v32  ;;  %v819_v13 = vadd.f32 %v731_v11, %v420_v9  ;;  %1537 = vmatmul.msk.f32.gmra.mxu1 %vm290_vm1, %v929_v53 }
  0xb3   : > { %v1293_v12 = vmax.f32 %v1261_v8, 0.0  ;;  %1572 = vmatmul.msk.f32.gmra.mxu2 %vm290_vm1, %v1713_v6 }
  0xb4   : > { %1502 = vmatmul.msk.f32.gmra.mxu0 %vm290_vm1, %v1844_v36  ;;  %v942_v36 = vld [vmem:[%s1710_s4 + $0x118] sm:$0xff] }
  0xb5   : > { %1325 = vst [vmem:[%s1867_s10 + $0x18] sm:$0xff] %v1293_v12  ;;  %v1909_v15 = vpop.f32.mrf.mxu3 }
  0xb6   : > { %v1074_v17 = vpop.f32.mrf.mxu2 }
  0xb7   : > { %v1162_v18 = vadd.f32 %v1074_v17, %v819_v13  ;;  %v734_v21 = vpop.f32.mrf.mxu1 }
  0xb9   : > { %v1262_v19 = vadd.f32 %v1855_v40, %v1162_v18  ;;  %v423_v20 = vpop.f32.mrf.mxu0 }
  0xba   : > { %1581 = vmatmul.msk.f32.gmra.mxu3 %vm290_vm1, %v1835_v34  ;;  %v820_v23 = vadd.f32 %v734_v21, %v423_v20  ;;  %1538 = vmatmul.msk.f32.gmra.mxu1 %vm290_vm1, %v930_v62 }
  0xbb   : > { %v1294_v22 = vmax.f32 %v1262_v19, 0.0  ;;  %1573 = vmatmul.msk.f32.gmra.mxu2 %vm290_vm1, %v1725_v10 }
  0xbc   : > { %1503 = vmatmul.msk.f32.gmra.mxu0 %vm290_vm1, %v1861_v44 }
  0xbd   : > { %1326 = vst [vmem:[%s1867_s10 + $0x20] sm:$0xff] %v1294_v22  ;;  %v1920_v24 = vpop.f32.mrf.mxu3 }
  0xbe   : > { %v1077_v25 = vpop.f32.mrf.mxu2 }
  0xbf   : > { %v1163_v26 = vadd.f32 %v1077_v25, %v820_v23  ;;  %v737_v30 = vpop.f32.mrf.mxu1 }
  0xc1   : > { %v1263_v28 = vadd.f32 %v1855_v40, %v1163_v26  ;;  %v426_v29 = vpop.f32.mrf.mxu0 }
  0xc2   : > { %1582 = vmatmul.msk.f32.gmra.mxu3 %vm290_vm1, %v941_v27  ;;  %v821_v32 = vadd.f32 %v737_v30, %v426_v29  ;;  %1539 = vmatmul.msk.f32.gmra.mxu1 %vm290_vm1, %v1713_v6 }
  0xc3   : > { %v1295_v31 = vmax.f32 %v1263_v28, 0.0  ;;  %1574 = vmatmul.msk.f32.gmra.mxu2 %vm290_vm1, %v1736_v14 }
  0xc4   : > { %1504 = vmatmul.msk.f32.gmra.mxu0 %vm290_vm1, %v929_v53 }
  0xc5   : > { %1327 = vst [vmem:[%s1867_s10 + $0x28] sm:$0xff] %v1295_v31  ;;  %v1931_v33 = vpop.f32.mrf.mxu3 }
  0xc6   : > { %v1080_v34 = vpop.f32.mrf.mxu2 }
  0xc7   : > { %v1164_v35 = vadd.f32 %v1080_v34, %v821_v32  ;;  %v740_v39 = vpop.f32.mrf.mxu1 }
  0xc9   : > { %v1264_v37 = vadd.f32 %v1855_v40, %v1164_v35  ;;  %v429_v38 = vpop.f32.mrf.mxu0 }
  0xca   : > { %1583 = vmatmul.msk.f32.gmra.mxu3 %vm290_vm1, %v942_v36  ;;  %v822_v42 = vadd.f32 %v740_v39, %v429_v38  ;;  %1540 = vmatmul.msk.f32.gmra.mxu1 %vm290_vm1, %v1725_v10 }
  0xcb   : > { %v1296_v14 = vmax.f32 %v1264_v37, 0.0  ;;  %1575 = vmatmul.msk.f32.gmra.mxu2 %vm290_vm1, %v1745_v16 }
  0xcc   : > { %1505 = vmatmul.msk.f32.gmra.mxu0 %vm290_vm1, %v930_v62 }
  0xcd   : > { %1328 = vst [vmem:[%s1867_s10 + $0x30] sm:$0xff] %v1296_v14  ;;  %v1942_v6 = vpop.f32.mrf.mxu3 }
  0xce   : > { %v1083_v43 = vpop.f32.mrf.mxu2 }
  0xcf   : > { %v1165_v44 = vadd.f32 %v1083_v43, %v822_v42  ;;  %v743_v47 = vpop.f32.mrf.mxu1 }
  0xd1   : > { %v1265_v45 = vadd.f32 %v1855_v40, %v1165_v44  ;;  %v432_v46 = vpop.f32.mrf.mxu0 }
  0xd2   : > { %v823_v16 = vadd.f32 %v743_v47, %v432_v46 }
  0xd3   : > { %v1297_v48 = vmax.f32 %v1265_v45, 0.0 }
  0xd5   : > { %1329 = vst [vmem:[%s1867_s10 + $0x38] sm:$0xff] %v1297_v48  ;;  %v1946_v49 = vpop.f32.mrf.mxu3 }
  0xd6   : > { %v1086_v51 = vpop.f32.mrf.mxu2 }
  0xd7   : > { %v1166_v52 = vadd.f32 %v1086_v51, %v823_v16  ;;  %v746_v54 = vpop.f32.mrf.mxu1 }
  0xd9   : > { %v1266_v10 = vadd.f32 %v1855_v40, %v1166_v52  ;;  %v435_v53 = vpop.f32.mrf.mxu0 }
  0xda   : > { %v824_v56 = vadd.f32 %v746_v54, %v435_v53 }
  0xdb   : > { %v1298_v55 = vmax.f32 %v1266_v10, 0.0 }
  0xdd   : > { %1330 = vst [vmem:[%s1867_s10 + $0x40] sm:$0xff] %v1298_v55  ;;  %v1950_v57 = vpop.f32.mrf.mxu3 }
  0xde   : > { %v1089_v58 = vpop.f32.mrf.mxu2 }
  0xdf   : > { %v1167_v60 = vadd.f32 %v1089_v58, %v824_v56  ;;  %v749_v63 = vpop.f32.mrf.mxu1 }
  0xe1   : > { %v1267_v61 = vadd.f32 %v1855_v40, %v1167_v60  ;;  %v438_v62 = vpop.f32.mrf.mxu0 }
  0xe2   : > { %v825_v1 = vadd.f32 %v749_v63, %v438_v62 }
  0xe3   : > { %v1299_v0 = vmax.f32 %v1267_v61, 0.0  ;;  %v839_v61 = vadd.f32 %v1946_v49, %v1857_v41 }
  0xe5   : > { %1331 = vst [vmem:[%s1867_s10 + $0x48] sm:$0xff] %v1299_v0  ;;  %v1954_v2 = vpop.f32.mrf.mxu3 }
  0xe6   : > { %v1092_v3 = vpop.f32.mrf.mxu2 }
  0xe7   : > { %v1168_v5 = vadd.f32 %v1092_v3, %v825_v1  ;;  %v752_v9 = vpop.f32.mrf.mxu1 }
  0xe9   : > { %v1268_v7 = vadd.f32 %v1855_v40, %v1168_v5  ;;  %v441_v8 = vpop.f32.mrf.mxu0 }
  0xea   : > { %v826_v12 = vadd.f32 %v752_v9, %v441_v8 }
  0xeb   : > { %v1300_v11 = vmax.f32 %v1268_v7, 0.0 }
  0xed   : > { %1332 = vst [vmem:[%s1867_s10 + $0x50] sm:$0xff] %v1300_v11  ;;  %v1958_v13 = vpop.f32.mrf.mxu3 }
  0xee   : > { %v1095_v17 = vpop.f32.mrf.mxu2 }
  0xef   : > { %v1169_v18 = vadd.f32 %v1095_v17, %v826_v12  ;;  %v755_v21 = vpop.f32.mrf.mxu1  ;;  %v840_v17 = vadd.f32 %v1950_v57, %v1876_v50  ;;  %v841_v50 = vadd.f32 %v1954_v2, %v1887_v59  ;;  %v842_v59 = vadd.f32 %v1958_v13, %v1898_v4 }
  0xf1   : > { %v1269_v19 = vadd.f32 %v1855_v40, %v1169_v18  ;;  %v444_v20 = vpop.f32.mrf.mxu0 }
  0xf2   : > { %v827_v23 = vadd.f32 %v755_v21, %v444_v20 }
  0xf3   : > { %v1301_v22 = vmax.f32 %v1269_v19, 0.0 }
  0xf5   : > { %1333 = vst [vmem:[%s1867_s10 + $0x58] sm:$0xff] %v1301_v22  ;;  %v1962_v25 = vpop.f32.mrf.mxu3 }
  0xf6   : > { %v1098_v26 = vpop.f32.mrf.mxu2  ;;  %v843_v4 = vadd.f32 %v1962_v25, %v1909_v15 }
  0xf7   : > { %v1170_v27 = vadd.f32 %v1098_v26, %v827_v23  ;;  %v758_v30 = vpop.f32.mrf.mxu1 }
  0xf9   : > { %v1270_v28 = vadd.f32 %v1855_v40, %v1170_v27  ;;  %v447_v29 = vpop.f32.mrf.mxu0 }
  0xfa   : > { %v828_v32 = vadd.f32 %v758_v30, %v447_v29 }
  0xfb   : > { %v1302_v31 = vmax.f32 %v1270_v28, 0.0 }
  0xfd   : > { %1334 = vst [vmem:[%s1867_s10 + $0x60] sm:$0xff] %v1302_v31  ;;  %v1966_v34 = vpop.f32.mrf.mxu3 }
  0xfe   : > { %v1101_v35 = vpop.f32.mrf.mxu2  ;;  %v844_v15 = vadd.f32 %v1966_v34, %v1920_v24 }
  0xff   : > { %v1171_v36 = vadd.f32 %v1101_v35, %v828_v32  ;;  %v761_v39 = vpop.f32.mrf.mxu1 }
 0x101   : > { %v1271_v37 = vadd.f32 %v1855_v40, %v1171_v36  ;;  %v450_v38 = vpop.f32.mrf.mxu0 }
 0x102   : > { %v829_v42 = vadd.f32 %v761_v39, %v450_v38 }
 0x103   : > { %v1303_v14 = vmax.f32 %v1271_v37, 0.0 }
 0x105   : > { %1335 = vst [vmem:[%s1867_s10 + $0x68] sm:$0xff] %v1303_v14  ;;  %v1970_v43 = vpop.f32.mrf.mxu3 }
 0x106   : > { %v1104_v44 = vpop.f32.mrf.mxu2  ;;  %v845_v24 = vadd.f32 %v1970_v43, %v1931_v33 }
 0x107   : > { %v1172_v45 = vadd.f32 %v1104_v44, %v829_v42  ;;  %v764_v48 = vpop.f32.mrf.mxu1 }
 0x109   : > { %v1272_v46 = vadd.f32 %v1855_v40, %v1172_v45  ;;  %v453_v47 = vpop.f32.mrf.mxu0 }
 0x10a   : > { %v830_v51 = vadd.f32 %v764_v48, %v453_v47 }
 0x10b   : > { %v1304_v16 = vmax.f32 %v1272_v46, 0.0 }
 0x10d   : > { %1336 = vst [vmem:[%s1867_s10 + $0x70] sm:$0xff] %v1304_v16  ;;  %v1974_v52 = vpop.f32.mrf.mxu3 }
 0x10e   : > { %v1107_v10 = vpop.f32.mrf.mxu2  ;;  %v846_v33 = vadd.f32 %v1974_v52, %v1942_v6 }
 0x10f   : > { %v1173_v53 = vadd.f32 %v1107_v10, %v830_v51  ;;  %v767_v56 = vpop.f32.mrf.mxu1 }
 0x111   : > { %v1273_v54 = vadd.f32 %v1855_v40, %v1173_v53  ;;  %v456_v55 = vpop.f32.mrf.mxu0 }
 0x112   : > { %v831_v60 = vadd.f32 %v767_v56, %v456_v55 }
 0x113   : > { %v1305_v58 = vmax.f32 %v1273_v54, 0.0 }
 0x115   : > { %1337 = vst [vmem:[%s1867_s10 + $0x78] sm:$0xff] %v1305_v58  ;;  %v1134_v63 = vpop.f32.mrf.mxu3 }
 0x116   : > { %v1110_v62 = vpop.f32.mrf.mxu2  ;;  %v1182_v1 = vadd.f32 %v1134_v63, %v839_v61 }
 0x117   : > { %v1174_v0 = vadd.f32 %v1110_v62, %v831_v60  ;;  %v770_v8 = vpop.f32.mrf.mxu1 }
 0x118   : > { %v1282_v5 = vadd.f32 %v1855_v40, %v1182_v1 }
 0x119   : > { %v1274_v3 = vadd.f32 %v1855_v40, %v1174_v0  ;;  %v459_v7 = vpop.f32.mrf.mxu0 }
 0x11a   : > { %v1314_v11 = vmax.f32 %v1282_v5, 0.0  ;;  %v832_v12 = vadd.f32 %v770_v8, %v459_v7 }
 0x11b   : > { %v1306_v9 = vmax.f32 %v1274_v3, 0.0 }
 0x11c   : > { %1346 = vst [vmem:[%s1867_s10 + $0xc0] sm:$0xff] %v1314_v11 }
 0x11d   : > { %1338 = vst [vmem:[%s1867_s10 + $0x80] sm:$0xff] %v1306_v9  ;;  %v1137_v49 = vpop.f32.mrf.mxu3 }
 0x11e   : > { %v1113_v41 = vpop.f32.mrf.mxu2  ;;  %v1183_v19 = vadd.f32 %v1137_v49, %v840_v17 }
 0x11f   : > { %v1175_v18 = vadd.f32 %v1113_v41, %v832_v12  ;;  %v773_v23 = vpop.f32.mrf.mxu1 }
 0x120   : > { %v1283_v21 = vadd.f32 %v1855_v40, %v1183_v19 }
 0x121   : > { %v1275_v20 = vadd.f32 %v1855_v40, %v1175_v18  ;;  %v462_v22 = vpop.f32.mrf.mxu0 }
 0x122   : > { %v1315_v27 = vmax.f32 %v1283_v21, 0.0  ;;  %v833_v28 = vadd.f32 %v773_v23, %v462_v22 }
 0x123   : > { %v1307_v26 = vmax.f32 %v1275_v20, 0.0 }
 0x124   : > { %1347 = vst [vmem:[%s1867_s10 + $0xc8] sm:$0xff] %v1315_v27 }
 0x125   : > { %1339 = vst [vmem:[%s1867_s10 + $0x88] sm:$0xff] %v1307_v26  ;;  %v1140_v29 = vpop.f32.mrf.mxu3 }
 0x126   : > { %v1116_v57 = vpop.f32.mrf.mxu2  ;;  %v1184_v31 = vadd.f32 %v1140_v29, %v841_v50 }
 0x127   : > { %v1176_v30 = vadd.f32 %v1116_v57, %v833_v28  ;;  %v776_v37 = vpop.f32.mrf.mxu1 }
 0x128   : > { %v1284_v35 = vadd.f32 %v1855_v40, %v1184_v31 }
 0x129   : > { %v1276_v32 = vadd.f32 %v1855_v40, %v1176_v30  ;;  %v465_v36 = vpop.f32.mrf.mxu0 }
 0x12a   : > { %v1316_v39 = vmax.f32 %v1284_v35, 0.0  ;;  %v834_v14 = vadd.f32 %v776_v37, %v465_v36 }
 0x12b   : > { %v1308_v38 = vmax.f32 %v1276_v32, 0.0 }
 0x12c   : > { %1348 = vst [vmem:[%s1867_s10 + $0xd0] sm:$0xff] %v1316_v39 }
 0x12d   : > { %1340 = vst [vmem:[%s1867_s10 + $0x90] sm:$0xff] %v1308_v38  ;;  %v1143_v42 = vpop.f32.mrf.mxu3 }
 0x12e   : > { %v1119_v2 = vpop.f32.mrf.mxu2  ;;  %v1185_v45 = vadd.f32 %v1143_v42, %v842_v59 }
 0x12f   : > { %v1177_v44 = vadd.f32 %v1119_v2, %v834_v14  ;;  %v779_v16 = vpop.f32.mrf.mxu1 }
 0x130   : > { %v1285_v47 = vadd.f32 %v1855_v40, %v1185_v45 }
 0x131   : > { %v1277_v46 = vadd.f32 %v1855_v40, %v1177_v44  ;;  %v468_v48 = vpop.f32.mrf.mxu0 }
 0x132   : > { %v1317_v10 = vmax.f32 %v1285_v47, 0.0  ;;  %v835_v53 = vadd.f32 %v779_v16, %v468_v48 }
 0x133   : > { %v1309_v51 = vmax.f32 %v1277_v46, 0.0 }
 0x134   : > { %1349 = vst [vmem:[%s1867_s10 + $0xd8] sm:$0xff] %v1317_v10 }
 0x135   : > { %1341 = vst [vmem:[%s1867_s10 + $0x98] sm:$0xff] %v1309_v51  ;;  %v1146_v54 = vpop.f32.mrf.mxu3 }
 0x136   : > { %v1122_v13 = vpop.f32.mrf.mxu2  ;;  %v1186_v56 = vadd.f32 %v1146_v54, %v843_v4 }
 0x137   : > { %v1178_v55 = vadd.f32 %v1122_v13, %v835_v53  ;;  %v782_v62 = vpop.f32.mrf.mxu1 }
 0x138   : > { %v1286_v60 = vadd.f32 %v1855_v40, %v1186_v56 }
 0x139   : > { %v1278_v58 = vadd.f32 %v1855_v40, %v1178_v55  ;;  %v471_v61 = vpop.f32.mrf.mxu0 }
 0x13a   : > { %v1318_v0 = vmax.f32 %v1286_v60, 0.0  ;;  %v836_v1 = vadd.f32 %v782_v62, %v471_v61 }
 0x13b   : > { %v1310_v63 = vmax.f32 %v1278_v58, 0.0 }
 0x13c   : > { %1350 = vst [vmem:[%s1867_s10 + $0xe0] sm:$0xff] %v1318_v0 }
 0x13d   : > { %1342 = vst [vmem:[%s1867_s10 + $0xa0] sm:$0xff] %v1310_v63  ;;  %v1149_v3 = vpop.f32.mrf.mxu3 }
 0x13e   : > { %v1125_v25 = vpop.f32.mrf.mxu2  ;;  %v1187_v7 = vadd.f32 %v1149_v3, %v844_v15 }
 0x13f   : > { %v1179_v5 = vadd.f32 %v1125_v25, %v836_v1  ;;  %v785_v12 = vpop.f32.mrf.mxu1 }
 0x140   : > { %v1287_v9 = vadd.f32 %v1855_v40, %v1187_v7 }
 0x141   : > { %v1279_v8 = vadd.f32 %v1855_v40, %v1179_v5  ;;  %v474_v11 = vpop.f32.mrf.mxu0 }
 0x142   : > { %v1319_v41 = vmax.f32 %v1287_v9, 0.0  ;;  %v837_v49 = vadd.f32 %v785_v12, %v474_v11 }
 0x143   : > { %v1311_v17 = vmax.f32 %v1279_v8, 0.0 }
 0x144   : > { %1351 = vst [vmem:[%s1867_s10 + $0xe8] sm:$0xff] %v1319_v41 }
 0x145   : > { %1343 = vst [vmem:[%s1867_s10 + $0xa8] sm:$0xff] %v1311_v17  ;;  %v1152_v18 = vpop.f32.mrf.mxu3 }
 0x146   : > { %v1128_v34 = vpop.f32.mrf.mxu2  ;;  %v1188_v20 = vadd.f32 %v1152_v18, %v845_v24 }
 0x147   : > { %v1180_v19 = vadd.f32 %v1128_v34, %v837_v49  ;;  %v788_v26 = vpop.f32.mrf.mxu1 }
 0x148   : > { %v1288_v22 = vadd.f32 %v1855_v40, %v1188_v20 }
 0x149   : > { %v1280_v21 = vadd.f32 %v1855_v40, %v1180_v19  ;;  %v477_v23 = vpop.f32.mrf.mxu0 }
 0x14a   : > { %v1320_v28 = vmax.f32 %v1288_v22, 0.0  ;;  %v838_v50 = vadd.f32 %v788_v26, %v477_v23 }
 0x14b   : > { %v1312_v27 = vmax.f32 %v1280_v21, 0.0 }
 0x14c   : > { %1352 = vst [vmem:[%s1867_s10 + $0xf0] sm:$0xff] %v1320_v28 }
 0x14d   : > { %1344 = vst [vmem:[%s1867_s10 + $0xb0] sm:$0xff] %v1312_v27  ;;  %v1155_v57 = vpop.f32.mrf.mxu3 }
 0x14e   : > { %v1131_v43 = vpop.f32.mrf.mxu2  ;;  %v1189_v30 = vadd.f32 %v1155_v57, %v846_v33 }
 0x14f   : > { %v1181_v29 = vadd.f32 %v1131_v43, %v838_v50 }
 0x150   : > { %v1289_v32 = vadd.f32 %v1855_v40, %v1189_v30 }
 0x151   : > { %v1281_v31 = vadd.f32 %v1855_v40, %v1181_v29 }
 0x152   : > { %v1321_v36 = vmax.f32 %v1289_v32, 0.0 }
 0x153   : > { %v1313_v35 = vmax.f32 %v1281_v31, 0.0 }
 0x154   : > { %1353 = vst [vmem:[%s1867_s10 + $0xf8] sm:$0xff] %v1321_v36 }
 0x155   : > { %1345 = vst [vmem:[%s1867_s10 + $0xb8] sm:$0xff] %v1313_v35 }
 0x156 PF: > { %s13_s14 = sadd.s32 1, %s1641_s14   ;;  %s2039_s12 = smov %s1637_s13 }
 0x157   : > { %p10_p5 = scmp.ge.s32.totalorder %s13_s14, 4   ;;  %s2040_s13 = smov %s2042_s15 }
 0x159   :  { %12 = sbr.rel (!%p10_p5) target bundleno = 2 (0x2), region = 70 }

</bundles_post_ra>
